<compile_context>
chip_gen: v7x
topology: tpu7x:2x2x1
jax: 0.10.0
libtpu: 0.0.40
codegen_flags: <defaults>
</compile_context>

<pallas_src>
import functools

import jax
import jax.numpy as jnp
from jax.experimental import pallas as pl
from jax.experimental.pallas import tpu as pltpu

_LANE = 128
_MAX_TN = 4096                  # column-split cap (elements) for very wide rows
_VMEM_LIVE_BUDGET = 12 << 20    # bytes: in + out + param blocks, double-buffered
_SMALL_INPUT_BYTES = 256 << 10  # below this, fused XLA is already at roofline


def _sublane_pack(dtype) -> int:
    # Second-minor tiling multiple for this dtype (f32: 8, bf16: 16, int8/fp8: 32).
    return max(8, 32 // jnp.dtype(dtype).itemsize)


def _round_up(x: int, m: int) -> int:
    return ((x + m - 1) // m) * m


def _round_down(x: int, m: int) -> int:
    return (x // m) * m


def _choose_tiles(rows: int, cols: int, itemsize: int, sub: int):
    """Pick (tm, tn) so live double-buffered VMEM stays under budget."""
    # Column tile: prefer the full row width (one contiguous DMA run per block,
    # j axis collapses); split only for very wide rows.
    tn = cols if cols <= _MAX_TN else _MAX_TN

    # Per-row live bytes: x in (x2 buffers) + out (x2) + (tm,2) f32 params
    # (pad to 128 lanes -> 512 B/row, x2 buffers).
    per_row = 4 * _round_up(tn, _LANE) * itemsize + 2 * _LANE * 4
    tm_budget = max(sub, _VMEM_LIVE_BUDGET // per_row)
    if tm_budget >= rows:
        tm = rows                                    # full dim (always legal)
    else:
        tm = max(sub, _round_down(tm_budget, sub))   # sublane-aligned, masked edge

    # v7x has 2 TensorCores and "parallel" axes are sharded across them; a
    # 1-block grid would leave one core idle (~2x loss of per-chip HBM BW).
    if pl.cdiv(rows, tm) * pl.cdiv(cols, tn) == 1:
        if rows > sub:
            tm = max(sub, _round_up(pl.cdiv(rows, 2), sub))
        elif cols > _LANE:
            tn = max(_LANE, _round_up(pl.cdiv(cols, 2), _LANE))
        # else: tensor is tiny; a single block on one core is fine.
    return tm, tn


def _eval_affine_kernel(x_ref, p_ref, o_ref):
    # x_ref: (TM, TN) activation tile.
    # p_ref: (TM, 2) float32 per-row params: [:, 0] = scale, [:, 1] = shift.
    # Pure element-wise FMA: safe to compute on masked OOB lanes of edge
    # blocks (store is masked); do NOT add reductions here.
    x = x_ref[...].astype(jnp.float32)
    scale = p_ref[:, 0:1]
    shift = p_ref[:, 1:2]
    o_ref[...] = (x * scale + shift).astype(o_ref.dtype)


@functools.partial(jax.jit, static_argnames=("training", "eps", "force_pallas"))
def eval_transform(x, gamma, beta, running_mean, running_var, *,
                   training=False, eps=1e-5, force_pallas=False):
    """EvalTransform.forward.

    x: (N, C, H, W). gamma/beta/running_mean/running_var: (C,).
    """
    if training:
        # Training mode: identity, exactly as in the PyTorch module.
        return x

    N, C, H, W = x.shape
    f32 = jnp.float32

    # Fold normalization into a per-channel scale/shift in f32 (plain-JAX glue).
    scale_c = gamma.astype(f32) * jax.lax.rsqrt(running_var.astype(f32) + f32(eps))
    shift_c = beta.astype(f32) - running_mean.astype(f32) * scale_c

    itemsize = jnp.dtype(x.dtype).itemsize
    if not force_pallas and x.size * itemsize < _SMALL_INPUT_BYTES:
        # Tiny tensors: fused XLA is already at roofline; skip kernel launch.
        y = (x.astype(f32) * scale_c[None, :, None, None]
             + shift_c[None, :, None, None])
        return y.astype(x.dtype)

    rows, cols = N * C, H * W
    sub = _sublane_pack(x.dtype)

    # Fused per-row params: (rows, 2) f32 = [scale, shift] for each (n, c) row.
    params = jnp.tile(jnp.stack([scale_c, shift_c], axis=-1), (N, 1))

    # NCHW -> (N*C, H*W): contiguous reshape, metadata-only.
    x2d = x.reshape(rows, cols)

    tm, tn = _choose_tiles(rows, cols, itemsize, sub)
    grid = (pl.cdiv(rows, tm), pl.cdiv(cols, tn))

    out2d = pl.pallas_call(
        _eval_affine_kernel,
        out_shape=jax.ShapeDtypeStruct((rows, cols), x.dtype),
        grid_spec=pl.GridSpec(
            grid=grid,
            in_specs=[
                pl.BlockSpec((tm, tn), lambda i, j: (i, j)),
                # Param block depends only on i; j varies fastest so its
                # re-DMA is skipped across consecutive grid steps.
                pl.BlockSpec((tm, 2), lambda i, j: (i, 0)),
            ],
            out_specs=pl.BlockSpec((tm, tn), lambda i, j: (i, j)),
        ),
        compiler_params=pltpu.CompilerParams(
            dimension_semantics=("parallel", "parallel")),
        cost_estimate=pl.CostEstimate(
            flops=2 * rows * cols,
            transcendentals=0,
            bytes_accessed=2 * rows * cols * itemsize + rows * 2 * 4),
    )(x2d, params)

    return out2d.reshape(N, C, H, W)


if __name__ == "__main__":
    key = jax.random.PRNGKey(0)
    k1, k2, k3 = jax.random.split(key, 3)

    def reference(x, gamma, beta, mean, var, eps=1e-5):
        scale = gamma / jnp.sqrt(var + eps)
        shift = beta - mean * scale
        return x * scale[None, :, None, None] + shift[None, :, None, None]

    C = 4
    gamma = 1.0 + 0.1 * jnp.arange(C, dtype=jnp.float32)
    beta = 0.05 * jnp.arange(C, dtype=jnp.float32)
    running_mean = 0.2 * jnp.arange(C, dtype=jnp.float32)
    running_var = 1.0 + 0.3 * jnp.arange(C, dtype=jnp.float32)

    # Case 1: lane-aligned spatial size (H*W = 256); grid splits into 2 blocks.
    x = jax.random.normal(k1, (2, C, 16, 16), dtype=jnp.float32)
    y_eval = eval_transform(x, gamma, beta, running_mean, running_var,
                            training=False, force_pallas=True)
    jax.block_until_ready(y_eval)
    y_ref = reference(x, gamma, beta, running_mean, running_var)
    assert jnp.allclose(y_eval, y_ref, atol=1e-5, rtol=1e-5)

    # Case 2: ragged spatial size (H*W = 49) -> full-width block, masked lanes,
    # no wrapper padding / un-padding.
    x2 = jax.random.normal(k2, (2, C, 7, 7), dtype=jnp.float32)
    y2 = eval_transform(x2, gamma, beta, running_mean, running_var,
                        training=False, force_pallas=True)
    jax.block_until_ready(y2)
    y2_ref = reference(x2, gamma, beta, running_mean, running_var)
    assert jnp.allclose(y2, y2_ref, atol=1e-5, rtol=1e-5)

    # Case 3: wider spatial size -> multi-block column grid (default path).
    x3 = jax.random.normal(k3, (2, C, 128, 192), dtype=jnp.float32)
    y3 = eval_transform(x3, gamma, beta, running_mean, running_var,
                        training=False)
    jax.block_until_ready(y3)
    y3_ref = reference(x3, gamma, beta, running_mean, running_var)
    assert jnp.allclose(y3, y3_ref, atol=1e-5, rtol=1e-5)

    # Training mode: exact identity pass-through (EvalTransform semantics).
    y_train = eval_transform(x, gamma, beta, running_mean, running_var,
                             training=True)
    jax.block_until_ready(y_train)
    assert jnp.array_equal(y_train, x)

    print("KERNEL_OK")
</pallas_src>

<mosaic_0001>
module attributes {stable_mosaic.version = 11 : i64} {
  func.func @_eval_affine_kernel(%arg0: i32, %arg1: i32, %arg2: memref<8x128xf32, #tpu.memory_space<vmem>>, %arg3: memref<8x2xf32, #tpu.memory_space<vmem>>, %arg4: memref<8x128xf32, #tpu.memory_space<vmem>>) attributes {dimension_semantics = [#tpu.dimension_semantics<parallel>, #tpu.dimension_semantics<parallel>], iteration_bounds = array<i64: 1, 2>, scalar_prefetch = 0 : i64, scratch_operands = 0 : i64, tpu.core_type = #tpu.core_type<tc>, window_params = [{transform_indices = @transform_0, window_bounds = array<i64: 8, 128>}, {transform_indices = @transform_1, window_bounds = array<i64: 8, 2>}, {transform_indices = @transform_2, window_bounds = array<i64: 8, 128>}]} {
    %c0 = arith.constant 0 : index
    %c0_0 = arith.constant 0 : index
    %0 = vector.load %arg2[%c0, %c0_0] : memref<8x128xf32, #tpu.memory_space<vmem>>, vector<8x128xf32>
    %c0_1 = arith.constant 0 : index
    %c0_2 = arith.constant 0 : index
    %1 = vector.load %arg3[%c0_1, %c0_2] : memref<8x2xf32, #tpu.memory_space<vmem>>, vector<8x1xf32>
    %c0_3 = arith.constant 0 : index
    %c1 = arith.constant 1 : index
    %2 = vector.load %arg3[%c0_3, %c1] : memref<8x2xf32, #tpu.memory_space<vmem>>, vector<8x1xf32>
    %3 = vector.broadcast %1 : vector<8x1xf32> to vector<8x128xf32>
    %4 = arith.mulf %0, %3 : vector<8x128xf32>
    %5 = vector.broadcast %2 : vector<8x1xf32> to vector<8x128xf32>
    %6 = arith.addf %4, %5 : vector<8x128xf32>
    %c0_4 = arith.constant 0 : index
    %c0_5 = arith.constant 0 : index
    %7 = vector.load %arg4[%c0_4, %c0_5] : memref<8x128xf32, #tpu.memory_space<vmem>>, vector<8x128xf32>
    tpu.vector_store %arg4[%c0_4, %c0_5], %6 {strides = array<i32>} : memref<8x128xf32, #tpu.memory_space<vmem>>, vector<8x128xf32>,
    return
  }
  func.func @transform_0(%arg0: i32, %arg1: i32) -> (i32, i32) {
    %c0_i32 = arith.constant 0 : i32
    return %arg0, %arg1 : i32, i32
  }
  func.func @transform_1(%arg0: i32, %arg1: i32) -> (i32, i32) {
    %c0_i32 = arith.constant 0 : i32
    %c0_i32_0 = arith.constant 0 : i32
    return %arg0, %c0_i32 : i32, i32
  }
  func.func @transform_2(%arg0: i32, %arg1: i32) -> (i32, i32) {
    %c0_i32 = arith.constant 0 : i32
    return %arg0, %arg1 : i32, i32
  }
}

</mosaic_0001>

<bundles_post_ra>
// kernel: eval_transform.1
= control target key start
LH: loop header
LB: loop body
LE: loop exit
PB: predicated region body
PF: predicated region fallthrough
CT: control target
= control target key end

     0   :  { %s384_s9 = smov 0   ;;  %s386_s10 = smov 0   ;;  %s417_s0 = inlined_call_operand.vmem [shape: f32[8,256], index: 0, kind: input, shape index: {}]   ;;  %s418_s1 = inlined_call_operand.vmem [shape: f32[8,2], index: 1, kind: input, shape index: {}]   ;;  %s419_s2 = inlined_call_operand.vmem [shape: f32[8,256], index: 2, kind: output, shape index: {}]  }
   0x1   :  { %s388_s11 = smov 0  }
   0x2 LB: > { %s21_s12 = sadd.s32 1, %s361_s10  ;;  %p310_p0 = scmp.ge.s32.totalorder %s365_s11, 1  ;;  %s365_s11 = sphi %s388_s11, %s12_s11   ;;  %s361_s10 = sphi %s386_s10, %s421_s10   ;;  %s357_s9 = sphi %s384_s9, %s420_s9  }
   0x3   : > { %p22_p1 = scmp.ge.s32.totalorder %s21_s12, 2  ;;  %p140_p2 = scmp.lt.s32.totalorder %s365_s11, 3 }
   0x5   : > { %s423_s12 = smov (%p22_p1, %s21_s12), 0  ;;  %p141_p3 = pnand %p310_p0, %p140_p2 }
   0x6   : > { %v193_v0 = vld [vmem:[%s418_s1] sm:$0xff] (!%p141_p3)  ;;  %v367_v1 = vmov (!%p141_p3), 0   ;;  %v368_v2 = vmov (!%p141_p3), 1   ;;  %p174_p4 = scmp.lt.s32.totalorder (!%p141_p3), %s357_s9, 1 }
   0x7   : > { %144 = sbr.rel (%p141_p3) target bundleno = 144 (0x90), region = 28  ;;  %341 = vset.pattern.permute.xlu0 (!%p141_p3), %v367_v1 }
   0x8   : > { %196 = vperm.xlu0 (!%p141_p3), %341, %v193_v0  }
   0xc   : > { %342 = vset.pattern.permute.xlu0 (!%p141_p3), %v368_v2 }
   0xd   : > { %201 = vperm.xlu0 (!%p141_p3), %342, %v193_v0  }
   0xe   : > { %s425_s9 = smov (!%p174_p4, %s357_s9), 1 }
   0xf   : > { %s311_s15 = sshll.u32 %s425_s9, 3 }
  0x10   : > { %s179_s18 = scalar_lea.vmem %s417_s0, %s311_s15  ;;  %s191_s21 = scalar_lea.vmem %s419_s2, %s311_s15 }
  0x11   : > { %v192_v4 = vld [vmem:[%s179_s18] sm:$0xff] }
  0x87   : > { %v197_v3 = vpop.permute.xlu0 %196 }
  0x88   : > { %v199_v5 = vmul.f32 %v197_v3, %v192_v4 }
  0x8c   : > { %v202_v6 = vpop.permute.xlu0 %201 }
  0x8d   : > { %v204_v7 = vadd.f32 %v202_v6, %v199_v5 }
  0x8f   : > { %205 = vst [vmem:[%s191_s21] sm:$0xff] %v204_v7 }
  0x90 PF: > { %s12_s11 = sadd.s32 1, %s365_s11   ;;  %s420_s9 = smov %s361_s10 }
  0x91   : > { %p9_p5 = scmp.ge.s32.totalorder %s12_s11, 4   ;;  %s421_s10 = smov %s423_s12 }
  0x93   :  { %11 = sbr.rel (!%p9_p5) target bundleno = 2 (0x2), region = 61 }

</bundles_post_ra>
